<compile_context>
chip_gen: v5e
topology: v5e:2x2
jax: 0.10.0
libtpu: 0.0.40
codegen_flags: <defaults>
</compile_context>

<pallas_src>
import numpy as np
import jax
import jax.numpy as jnp
from jax import lax
from jax.experimental import pallas as pl
from jax.experimental.pallas import tpu as pltpu

_BN_EPS = 1e-5


def _round_up(n, m):
    return ((n + m - 1) // m) * m


def _make_coords(hp, wp, dtype=jnp.float32):
    # Reproduces AddCoords (with_r=False) exactly, including its normalization
    # quirk: x_dim = H (PyTorch dim 2), y_dim = W (dim 3)
    #   xx_channel[i, j] = 2 * j / (x_dim - 1) - 1   (column idx, normalized by H-1)
    #   yy_channel[i, j] = 2 * i / (y_dim - 1) - 1   (row idx,    normalized by W-1)
    # NOTE: hp == 1 or wp == 1 gives inf, exactly like the PyTorch module.
    jj = jnp.arange(wp, dtype=dtype)
    ii = jnp.arange(hp, dtype=dtype)
    xx = jnp.broadcast_to(jj[None, :], (hp, wp)) / (hp - 1) * 2.0 - 1.0
    yy = jnp.broadcast_to(ii[:, None], (hp, wp)) / (wp - 1) * 2.0 - 1.0
    return xx, yy


def _pack_weight(w_oihw, cin_pad):
    """OIHW -> (cout, 9*cin_pad) bf16 with k = (dy*3 + dx)*cin_pad + ci."""
    cout, cin_aug, kh, kw = w_oihw.shape
    w = jnp.pad(w_oihw, ((0, 0), (0, cin_pad - cin_aug), (0, 0), (0, 0)))
    w = jnp.transpose(w, (0, 2, 3, 1)).reshape(cout, kh * kw * cin_pad)
    return w.astype(jnp.bfloat16)


def _pick_images_per_block(batch):
    # Batch images per grid step (amortizes ~0.35us/step overhead) but keep >=2
    # grid steps when possible so v7x's two TensorCores both get work.
    for bb in (8, 4, 2):
        if batch % bb == 0 and batch // bb >= 2:
            return bb
    return 1


def _make_downconv_kernel(bb, cout, hp, wp):
    wr = wp + 2                       # padded row length (lane stride of a row)
    nf = hp * wr                      # flat conv output length (2 junk cols / row)
    off0 = wr + 1                     # flat offset of interior position (1, 1)
    taps = [dy * wr + dx for dy in range(3) for dx in range(3)]

    def kernel(x1_ref, w1_ref, w2_ref, bn_ref, coords2_ref, valid_ref,
               o_ref, pad2_ref):
        s1 = bn_ref[:, 0:1]
        b1 = bn_ref[:, 1:2]
        s2 = bn_ref[:, 2:3]
        b2 = bn_ref[:, 3:4]
        valid = valid_ref[...]                       # (1, nf) f32 junk-column mask

        # conv2's padded input lives in a VMEM scratch: zero ring / spare
        # channels, coord channels written once (identical for every image).
        pad2_ref[...] = jnp.zeros_like(pad2_ref)
        pad2_ref[cout:cout + 2, :] = coords2_ref[...]

        for i in range(bb):
            # ---- CoordConv1 + BN + ReLU : one bf16 im2col matmul on the MXU ----
            row1 = x1_ref[i]                                         # (cin1_p, L) bf16
            p1 = jnp.concatenate([row1[:, t:t + nf] for t in taps], axis=0)
            y1 = jnp.dot(w1_ref[...], p1, preferred_element_type=jnp.float32)
            y1 = jnp.maximum(y1 * s1 + b1, 0.0)                      # f32 VPU epilogue
            # Write into conv2's padded scratch; masking the 2 junk columns per
            # row keeps the zero-padding ring intact.
            pad2_ref[0:cout, off0:off0 + nf] = (y1 * valid).astype(pad2_ref.dtype)

            # ---- CoordConv2 + BN + ReLU ----------------------------------------
            row2 = pad2_ref[...]                                     # (cin2_p, L) bf16
            p2 = jnp.concatenate([row2[:, t:t + nf] for t in taps], axis=0)
            y2 = jnp.dot(w2_ref[...], p2, preferred_element_type=jnp.float32)
            y2 = jnp.maximum(y2 * s2 + b2, 0.0)
            o_ref[i] = y2.astype(o_ref.dtype)

    return kernel


# ---------------------------------------------------------------------------
# DownConv forward (Pallas path).
# TODO(synk): BatchNorm is eval-mode only (running stats folded into per-channel
# scale/bias); train-mode batch statistics are not computed.
# ---------------------------------------------------------------------------
def downconv_forward(x_nchw, params, *, images_per_block=None):
    batch, cin, h, w = x_nchw.shape
    assert h % 2 == 0 and w % 2 == 0, "MaxPool2d(2) path requires even H, W"
    hp, wp = h // 2, w // 2
    cout = params["w1"].shape[0]
    cin1, cin2 = cin + 2, cout + 2
    cin1_p, cin2_p = _round_up(cin1, 8), _round_up(cin2, 8)
    wr = wp + 2
    flat_len = (hp + 2) * wr + 2      # +2 so the last tap window stays in bounds
    nf = hp * wr

    # ---- single fused XLA prep pass over x: 2x2 maxpool, coord channels,
    #      channel-pad to a multiple of 8, spatial zero-pad, flatten, bf16 ----
    pooled = x_nchw.reshape(batch, cin, hp, 2, wp, 2).max(axis=(3, 5))
    xx, yy = _make_coords(hp, wp, jnp.float32)
    coords = jnp.broadcast_to(jnp.stack([xx, yy], 0)[None], (batch, 2, hp, wp))
    feat = jnp.concatenate([pooled, coords], axis=1)
    feat = jnp.pad(feat, ((0, 0), (0, cin1_p - cin1), (1, 1), (1, 1)))
    x1 = jnp.pad(feat.reshape(batch, cin1_p, (hp + 2) * wr),
                 ((0, 0), (0, 0), (0, 2))).astype(jnp.bfloat16)

    # conv2's coord channels, pre-padded + flattened (copied into VMEM in-kernel).
    cpad = jnp.pad(jnp.stack([xx, yy], 0), ((0, 0), (1, 1), (1, 1)))
    coords2 = jnp.pad(cpad.reshape(2, (hp + 2) * wr),
                      ((0, 0), (0, 2))).astype(jnp.bfloat16)

    # 1.0 for real output columns, 0.0 for the 2 junk columns per flattened row.
    valid = (jnp.arange(nf, dtype=jnp.int32) % wr < wp)
    valid = valid.astype(jnp.float32).reshape(1, nf)

    w1 = _pack_weight(params["w1"], cin1_p)           # (cout, 9*cin1_p) bf16
    w2 = _pack_weight(params["w2"], cin2_p)           # (cout, 9*cin2_p) bf16
    bn = jnp.stack([params["s1"], params["b1"], params["s2"], params["b2"]],
                   axis=1).astype(jnp.float32)        # (cout, 4)

    bb = images_per_block or _pick_images_per_block(batch)
    assert batch % bb == 0

    # Explicit VMEM cap with headroom; kept below v7x's 64 MiB physical VMEM.
    block_bytes = (bb * cin1_p * flat_len * 2 + bb * cout * nf * 4 +
                   cout * 9 * (cin1_p + cin2_p) * 2 + cout * 4 * 4 +
                   2 * flat_len * 2 + nf * 4 + cin2_p * flat_len * 2 +
                   9 * (cin1_p + cin2_p) * nf * 2)
    vmem_limit = int(min(max(8 * block_bytes, 16 * 1024 * 1024),
                         48 * 1024 * 1024))

    kernel = _make_downconv_kernel(bb, cout, hp, wp)
    out_flat = pl.pallas_call(
        kernel,
        out_shape=jax.ShapeDtypeStruct((batch, cout, nf), x_nchw.dtype),
        grid=(batch // bb,),
        in_specs=[
            pl.BlockSpec((bb, cin1_p, flat_len), lambda g: (g, 0, 0)),
            pl.BlockSpec((cout, 9 * cin1_p), lambda g: (0, 0)),
            pl.BlockSpec((cout, 9 * cin2_p), lambda g: (0, 0)),
            pl.BlockSpec((cout, 4), lambda g: (0, 0)),
            pl.BlockSpec((2, flat_len), lambda g: (0, 0)),
            pl.BlockSpec((1, nf), lambda g: (0, 0)),
        ],
        out_specs=pl.BlockSpec((bb, cout, nf), lambda g: (g, 0, 0)),
        scratch_shapes=[pltpu.VMEM((cin2_p, flat_len), jnp.bfloat16)],
        compiler_params=pltpu.CompilerParams(
            dimension_semantics=("parallel",),
            vmem_limit_bytes=vmem_limit),
    )(x1, w1, w2, bn, coords2, valid)

    # Drop the 2 junk columns per row: free (contiguous) reshape + tiny slice.
    return out_flat.reshape(batch, cout, hp, wr)[:, :, :, :wp]


# ---------------------------------------------------------------------------
# Parameter init (PyTorch-convention OIHW weights; BN folded into scale/bias).
# ---------------------------------------------------------------------------
def init_params(key, in_ch, out_ch):
    ks = jax.random.split(key, 6)
    fan1 = (in_ch + 2) * 9
    fan2 = (out_ch + 2) * 9
    w1 = jax.random.uniform(ks[0], (out_ch, in_ch + 2, 3, 3), jnp.float32,
                            -1.0 / np.sqrt(fan1), 1.0 / np.sqrt(fan1))
    w2 = jax.random.uniform(ks[1], (out_ch, out_ch + 2, 3, 3), jnp.float32,
                            -1.0 / np.sqrt(fan2), 1.0 / np.sqrt(fan2))
    g1 = 1.0 + 0.1 * jax.random.normal(ks[2], (out_ch,), jnp.float32)
    be1 = 0.1 * jax.random.normal(ks[3], (out_ch,), jnp.float32)
    g2 = 1.0 + 0.1 * jax.random.normal(ks[4], (out_ch,), jnp.float32)
    be2 = 0.1 * jax.random.normal(ks[5], (out_ch,), jnp.float32)
    m1 = 0.05 * jnp.arange(out_ch, dtype=jnp.float32)
    v1 = 1.0 + 0.10 * jnp.arange(out_ch, dtype=jnp.float32)
    m2 = -0.03 * jnp.arange(out_ch, dtype=jnp.float32)
    v2 = 1.0 + 0.05 * jnp.arange(out_ch, dtype=jnp.float32)
    s1 = g1 / jnp.sqrt(v1 + _BN_EPS)
    b1 = be1 - m1 * s1
    s2 = g2 / jnp.sqrt(v2 + _BN_EPS)
    b2 = be2 - m2 * s2
    return {"w1": w1, "s1": s1, "b1": b1, "w2": w2, "s2": s2, "b2": b2}


# ---------------------------------------------------------------------------
# Pure-JAX reference (NCHW, lax.conv). operand_dtype=bf16 mirrors the kernel's
# bf16-operand / f32-accumulate matmuls; f32 is the exact module semantics.
# ---------------------------------------------------------------------------
def _ref_block(x, w_oihw, scale, bias, operand_dtype):
    b, c, hp, wp = x.shape
    xx, yy = _make_coords(hp, wp, jnp.float32)
    coords = jnp.broadcast_to(jnp.stack([xx, yy], 0)[None], (b, 2, hp, wp))
    xc = jnp.concatenate([x, coords], axis=1)
    y = lax.conv_general_dilated(
        xc.astype(operand_dtype), w_oihw.astype(operand_dtype),
        window_strides=(1, 1), padding=((1, 1), (1, 1)),
        dimension_numbers=("NCHW", "OIHW", "NCHW"),
        preferred_element_type=jnp.float32)
    y = y * scale[None, :, None, None] + bias[None, :, None, None]
    return jnp.maximum(y, 0.0)


def ref_forward(x_nchw, params, operand_dtype=jnp.float32):
    b, c, h, w = x_nchw.shape
    xp = x_nchw.reshape(b, c, h // 2, 2, w // 2, 2).max(axis=(3, 5))
    y = _ref_block(xp, params["w1"], params["s1"], params["b1"], operand_dtype)
    y = _ref_block(y, params["w2"], params["s2"], params["b2"], operand_dtype)
    return y


if __name__ == "__main__":
    B, in_ch, H, W = 2, 4, 16, 16
    out_ch = 8
    key = jax.random.PRNGKey(0)
    kx, kp = jax.random.split(key)
    x = jax.random.normal(kx, (B, in_ch, H, W), jnp.float32)
    params = init_params(kp, in_ch, out_ch)

    y = jax.jit(downconv_forward)(x, params)
    jax.block_until_ready(y)
    assert y.shape == (B, out_ch, H // 2, W // 2), y.shape

    # Strong check: reference with the same bf16-operand / f32-accumulate convs.
    y_ref_bf16 = ref_forward(x, params, operand_dtype=jnp.bfloat16)
    np.testing.assert_allclose(np.asarray(y), np.asarray(y_ref_bf16),
                               rtol=2e-3, atol=2e-4)

    # Semantic sanity check vs. the pure-f32 module (loose: bf16 MXU operands).
    y_ref_f32 = ref_forward(x, params, operand_dtype=jnp.float32)
    np.testing.assert_allclose(np.asarray(y), np.asarray(y_ref_f32),
                               rtol=5e-2, atol=5e-2)
    print("KERNEL_OK")
</pallas_src>

<mosaic_0001>
module attributes {stable_mosaic.version = 11 : i64} {
  func.func @kernel(%arg0: i32, %arg1: memref<1x8x102xbf16, #tpu.memory_space<vmem>>, %arg2: memref<8x72xbf16, #tpu.memory_space<vmem>>, %arg3: memref<8x144xbf16, #tpu.memory_space<vmem>>, %arg4: memref<8x4xf32, #tpu.memory_space<vmem>>, %arg5: memref<2x102xbf16, #tpu.memory_space<vmem>>, %arg6: memref<1x80xf32, #tpu.memory_space<vmem>>, %arg7: memref<1x8x80xf32, #tpu.memory_space<vmem>>, %arg8: memref<16x102xbf16, #tpu.memory_space<vmem>>) attributes {dimension_semantics = [#tpu.dimension_semantics<parallel>], iteration_bounds = array<i64: 2>, scalar_prefetch = 0 : i64, scratch_operands = 1 : i64, tpu.core_type = #tpu.core_type<tc>, window_params = [{transform_indices = @transform_0, window_bounds = array<i64: 1, 8, 102>}, {pipeline_mode = #tpu.pipeline_mode<synchronous>, transform_indices = @transform_1, window_bounds = array<i64: 8, 72>}, {pipeline_mode = #tpu.pipeline_mode<synchronous>, transform_indices = @transform_2, window_bounds = array<i64: 8, 144>}, {pipeline_mode = #tpu.pipeline_mode<synchronous>, transform_indices = @transform_3, window_bounds = array<i64: 8, 4>}, {pipeline_mode = #tpu.pipeline_mode<synchronous>, transform_indices = @transform_4, window_bounds = array<i64: 2, 102>}, {pipeline_mode = #tpu.pipeline_mode<synchronous>, transform_indices = @transform_5, window_bounds = array<i64: 1, 80>}, {transform_indices = @transform_6, window_bounds = array<i64: 1, 8, 80>}]} {
    %c0 = arith.constant 0 : index
    %c0_0 = arith.constant 0 : index
    %0 = vector.load %arg4[%c0, %c0_0] : memref<8x4xf32, #tpu.memory_space<vmem>>, vector<8x1xf32>
    %c0_1 = arith.constant 0 : index
    %c1 = arith.constant 1 : index
    %1 = vector.load %arg4[%c0_1, %c1] : memref<8x4xf32, #tpu.memory_space<vmem>>, vector<8x1xf32>
    %c0_2 = arith.constant 0 : index
    %c2 = arith.constant 2 : index
    %2 = vector.load %arg4[%c0_2, %c2] : memref<8x4xf32, #tpu.memory_space<vmem>>, vector<8x1xf32>
    %c0_3 = arith.constant 0 : index
    %c3 = arith.constant 3 : index
    %3 = vector.load %arg4[%c0_3, %c3] : memref<8x4xf32, #tpu.memory_space<vmem>>, vector<8x1xf32>
    %c0_4 = arith.constant 0 : index
    %c0_5 = arith.constant 0 : index
    %4 = vector.load %arg6[%c0_4, %c0_5] : memref<1x80xf32, #tpu.memory_space<vmem>>, vector<1x80xf32>
    %cst = arith.constant 0.000000e+00 : bf16
    %5 = vector.broadcast %cst : bf16 to vector<16x102xbf16>
    %c0_6 = arith.constant 0 : index
    %c0_7 = arith.constant 0 : index
    %6 = vector.load %arg8[%c0_6, %c0_7] : memref<16x102xbf16, #tpu.memory_space<vmem>>, vector<16x102xbf16>
    tpu.vector_store %arg8[%c0_6, %c0_7], %5 {strides = array<i32>} : memref<16x102xbf16, #tpu.memory_space<vmem>>, vector<16x102xbf16>,
    %c0_8 = arith.constant 0 : index
    %c0_9 = arith.constant 0 : index
    %7 = vector.load %arg5[%c0_8, %c0_9] : memref<2x102xbf16, #tpu.memory_space<vmem>>, vector<2x102xbf16>
    %c8 = arith.constant 8 : index
    %c0_10 = arith.constant 0 : index
    %8 = vector.load %arg8[%c8, %c0_10] : memref<16x102xbf16, #tpu.memory_space<vmem>>, vector<2x102xbf16>
    tpu.vector_store %arg8[%c8, %c0_10], %7 {strides = array<i32>} : memref<16x102xbf16, #tpu.memory_space<vmem>>, vector<2x102xbf16>,
    %c0_11 = arith.constant 0 : index
    %c0_12 = arith.constant 0 : index
    %c0_13 = arith.constant 0 : index
    %9 = vector.load %arg1[%c0_11, %c0_12, %c0_13] : memref<1x8x102xbf16, #tpu.memory_space<vmem>>, vector<1x8x102xbf16>
    %10 = vector.shape_cast %9 : vector<1x8x102xbf16> to vector<8x102xbf16>
    %11 = vector.extract_strided_slice %10 {offsets = [0, 0], sizes = [8, 80], strides = [1, 1]} : vector<8x102xbf16> to vector<8x80xbf16>
    %12 = vector.extract_strided_slice %10 {offsets = [0, 1], sizes = [8, 80], strides = [1, 1]} : vector<8x102xbf16> to vector<8x80xbf16>
    %13 = vector.extract_strided_slice %10 {offsets = [0, 2], sizes = [8, 80], strides = [1, 1]} : vector<8x102xbf16> to vector<8x80xbf16>
    %14 = vector.extract_strided_slice %10 {offsets = [0, 10], sizes = [8, 80], strides = [1, 1]} : vector<8x102xbf16> to vector<8x80xbf16>
    %15 = vector.extract_strided_slice %10 {offsets = [0, 11], sizes = [8, 80], strides = [1, 1]} : vector<8x102xbf16> to vector<8x80xbf16>
    %16 = vector.extract_strided_slice %10 {offsets = [0, 12], sizes = [8, 80], strides = [1, 1]} : vector<8x102xbf16> to vector<8x80xbf16>
    %17 = vector.extract_strided_slice %10 {offsets = [0, 20], sizes = [8, 80], strides = [1, 1]} : vector<8x102xbf16> to vector<8x80xbf16>
    %18 = vector.extract_strided_slice %10 {offsets = [0, 21], sizes = [8, 80], strides = [1, 1]} : vector<8x102xbf16> to vector<8x80xbf16>
    %19 = vector.extract_strided_slice %10 {offsets = [0, 22], sizes = [8, 80], strides = [1, 1]} : vector<8x102xbf16> to vector<8x80xbf16>
    %20 = tpu.concatenate %11, %12, %13, %14, %15, %16, %17, %18, %19 in 0 : vector<8x80xbf16>, vector<8x80xbf16>, vector<8x80xbf16>, vector<8x80xbf16>, vector<8x80xbf16>, vector<8x80xbf16>, vector<8x80xbf16>, vector<8x80xbf16>, vector<8x80xbf16> -> vector<72x80xbf16>
    %c0_14 = arith.constant 0 : index
    %c0_15 = arith.constant 0 : index
    %21 = vector.load %arg2[%c0_14, %c0_15] : memref<8x72xbf16, #tpu.memory_space<vmem>>, vector<8x72xbf16>
    %cst_16 = arith.constant dense<0.000000e+00> : vector<8x80xf32>
    %22 = tpu.matmul %21, %20, %cst_16 {dimension_numbers = #tpu.dot_dimension_numbers<[1], [0], [0], [1], [0, 0, 1, 1], [], []>} : vector<8x72xbf16>, vector<72x80xbf16>, vector<8x80xf32> -> vector<8x80xf32>
    %23 = vector.broadcast %0 : vector<8x1xf32> to vector<8x80xf32>
    %24 = arith.mulf %22, %23 : vector<8x80xf32>
    %25 = vector.broadcast %1 : vector<8x1xf32> to vector<8x80xf32>
    %26 = arith.addf %24, %25 : vector<8x80xf32>
    %cst_17 = arith.constant 0.000000e+00 : f32
    %27 = vector.broadcast %cst_17 : f32 to vector<8x80xf32>
    %28 = arith.maximumf %26, %27 : vector<8x80xf32>
    %29 = vector.broadcast %4 : vector<1x80xf32> to vector<8x80xf32>
    %30 = arith.mulf %28, %29 : vector<8x80xf32>
    %31 = arith.truncf %30 : vector<8x80xf32> to vector<8x80xbf16>
    %c0_18 = arith.constant 0 : index
    %c11 = arith.constant 11 : index
    %32 = vector.load %arg8[%c0_18, %c11] : memref<16x102xbf16, #tpu.memory_space<vmem>>, vector<8x80xbf16>
    tpu.vector_store %arg8[%c0_18, %c11], %31 {strides = array<i32>} : memref<16x102xbf16, #tpu.memory_space<vmem>>, vector<8x80xbf16>,
    %c0_19 = arith.constant 0 : index
    %c0_20 = arith.constant 0 : index
    %33 = vector.load %arg8[%c0_19, %c0_20] : memref<16x102xbf16, #tpu.memory_space<vmem>>, vector<16x102xbf16>
    %34 = vector.extract_strided_slice %33 {offsets = [0, 0], sizes = [16, 80], strides = [1, 1]} : vector<16x102xbf16> to vector<16x80xbf16>
    %35 = vector.extract_strided_slice %33 {offsets = [0, 1], sizes = [16, 80], strides = [1, 1]} : vector<16x102xbf16> to vector<16x80xbf16>
    %36 = vector.extract_strided_slice %33 {offsets = [0, 2], sizes = [16, 80], strides = [1, 1]} : vector<16x102xbf16> to vector<16x80xbf16>
    %37 = vector.extract_strided_slice %33 {offsets = [0, 10], sizes = [16, 80], strides = [1, 1]} : vector<16x102xbf16> to vector<16x80xbf16>
    %38 = vector.extract_strided_slice %33 {offsets = [0, 11], sizes = [16, 80], strides = [1, 1]} : vector<16x102xbf16> to vector<16x80xbf16>
    %39 = vector.extract_strided_slice %33 {offsets = [0, 12], sizes = [16, 80], strides = [1, 1]} : vector<16x102xbf16> to vector<16x80xbf16>
    %40 = vector.extract_strided_slice %33 {offsets = [0, 20], sizes = [16, 80], strides = [1, 1]} : vector<16x102xbf16> to vector<16x80xbf16>
    %41 = vector.extract_strided_slice %33 {offsets = [0, 21], sizes = [16, 80], strides = [1, 1]} : vector<16x102xbf16> to vector<16x80xbf16>
    %42 = vector.extract_strided_slice %33 {offsets = [0, 22], sizes = [16, 80], strides = [1, 1]} : vector<16x102xbf16> to vector<16x80xbf16>
    %43 = tpu.concatenate %34, %35, %36, %37, %38, %39, %40, %41, %42 in 0 : vector<16x80xbf16>, vector<16x80xbf16>, vector<16x80xbf16>, vector<16x80xbf16>, vector<16x80xbf16>, vector<16x80xbf16>, vector<16x80xbf16>, vector<16x80xbf16>, vector<16x80xbf16> -> vector<144x80xbf16>
    %c0_21 = arith.constant 0 : index
    %c0_22 = arith.constant 0 : index
    %44 = vector.load %arg3[%c0_21, %c0_22] : memref<8x144xbf16, #tpu.memory_space<vmem>>, vector<8x144xbf16>
    %cst_23 = arith.constant dense<0.000000e+00> : vector<8x80xf32>
    %45 = tpu.matmul %44, %43, %cst_23 {dimension_numbers = #tpu.dot_dimension_numbers<[1], [0], [0], [1], [0, 0, 1, 1], [], []>} : vector<8x144xbf16>, vector<144x80xbf16>, vector<8x80xf32> -> vector<8x80xf32>
    %46 = vector.broadcast %2 : vector<8x1xf32> to vector<8x80xf32>
    %47 = arith.mulf %45, %46 : vector<8x80xf32>
    %48 = vector.broadcast %3 : vector<8x1xf32> to vector<8x80xf32>
    %49 = arith.addf %47, %48 : vector<8x80xf32>
    %cst_24 = arith.constant 0.000000e+00 : f32
    %50 = vector.broadcast %cst_24 : f32 to vector<8x80xf32>
    %51 = arith.maximumf %49, %50 : vector<8x80xf32>
    %c0_25 = arith.constant 0 : index
    %c0_26 = arith.constant 0 : index
    %c0_27 = arith.constant 0 : index
    %52 = vector.load %arg7[%c0_25, %c0_26, %c0_27] : memref<1x8x80xf32, #tpu.memory_space<vmem>>, vector<1x8x80xf32>
    %53 = vector.shape_cast %52 : vector<1x8x80xf32> to vector<8x80xf32>
    %54 = vector.shape_cast %51 : vector<8x80xf32> to vector<1x8x80xf32>
    tpu.vector_store %arg7[%c0_25, %c0_26, %c0_27], %54 {strides = array<i32>} : memref<1x8x80xf32, #tpu.memory_space<vmem>>, vector<1x8x80xf32>,
    return
  }
  func.func @transform_0(%arg0: i32) -> (i32, i32, i32) {
    %c0_i32 = arith.constant 0 : i32
    %c0_i32_0 = arith.constant 0 : i32
    %c0_i32_1 = arith.constant 0 : i32
    return %arg0, %c0_i32, %c0_i32_0 : i32, i32, i32
  }
  func.func @transform_1(%arg0: i32) -> (i32, i32) {
    %c0_i32 = arith.constant 0 : i32
    %c0_i32_0 = arith.constant 0 : i32
    %c0_i32_1 = arith.constant 0 : i32
    return %c0_i32, %c0_i32_0 : i32, i32
  }
  func.func @transform_2(%arg0: i32) -> (i32, i32) {
    %c0_i32 = arith.constant 0 : i32
    %c0_i32_0 = arith.constant 0 : i32
    %c0_i32_1 = arith.constant 0 : i32
    return %c0_i32, %c0_i32_0 : i32, i32
  }
  func.func @transform_3(%arg0: i32) -> (i32, i32) {
    %c0_i32 = arith.constant 0 : i32
    %c0_i32_0 = arith.constant 0 : i32
    %c0_i32_1 = arith.constant 0 : i32
    return %c0_i32, %c0_i32_0 : i32, i32
  }
  func.func @transform_4(%arg0: i32) -> (i32, i32) {
    %c0_i32 = arith.constant 0 : i32
    %c0_i32_0 = arith.constant 0 : i32
    %c0_i32_1 = arith.constant 0 : i32
    return %c0_i32, %c0_i32_0 : i32, i32
  }
  func.func @transform_5(%arg0: i32) -> (i32, i32) {
    %c0_i32 = arith.constant 0 : i32
    %c0_i32_0 = arith.constant 0 : i32
    %c0_i32_1 = arith.constant 0 : i32
    return %c0_i32, %c0_i32_0 : i32, i32
  }
  func.func @transform_6(%arg0: i32) -> (i32, i32, i32) {
    %c0_i32 = arith.constant 0 : i32
    %c0_i32_0 = arith.constant 0 : i32
    %c0_i32_1 = arith.constant 0 : i32
    return %arg0, %c0_i32, %c0_i32_0 : i32, i32, i32
  }
}

</mosaic_0001>

<bundles_post_ra>
// kernel: downconv_forward.1
= control target key start
LH: loop header
LB: loop body
LE: loop exit
PB: predicated region body
PF: predicated region fallthrough
CT: control target
= control target key end

     0   :  { %s570_s21 = smov 0   ;;  %s633_s0 = inlined_call_operand.vmem [shape: bf16[2,8,102], index: 0, kind: input, shape index: {}]   ;;  %s634_s1 = inlined_call_operand.vmem [shape: bf16[8,72], index: 1, kind: input, shape index: {}]   ;;  %s635_s2 = inlined_call_operand.vmem [shape: bf16[8,144], index: 2, kind: input, shape index: {}]   ;;  %s636_s3 = inlined_call_operand.vmem [shape: f32[8,4], index: 3, kind: input, shape index: {}]   ;;  %s637_s4 = inlined_call_operand.vmem [shape: bf16[2,102], index: 4, kind: input, shape index: {}]   ;;  %s638_s5 = inlined_call_operand.vmem [shape: f32[1,80], index: 5, kind: input, shape index: {}]   ;;  %s639_s6 = inlined_call_operand.vmem [shape: f32[2,8,80], index: 6, kind: output, shape index: {}]  }
   0x1 LB: > { %s472_s22 = sadd.s32 4294967295, %s520_s21   ;;  %p476_p0 = scmp.ge.s32.totalorder %s520_s21, 1  ;;  %s520_s21 = sphi %s570_s21, %s16_s21  }
   0x2   : > { %p211_p1 = scmp.lt.s32.totalorder %s520_s21, 3 }
   0x4   : > { %p212_p2 = pnand %p476_p0, %p211_p1 }
   0x5   : > { %p239_p3 = scmp.lt.s32.totalorder (!%p212_p2), %s472_s22, 1  ;;  %s522_s27 = smov (!%p212_p2), 107  }
   0x6   : > { %215 = sbr.rel (%p212_p2) target bundleno = 696 (0x2b8), region = 44  ;;  %s523_s28 = smov (!%p212_p2), 106  }
   0x7   : > { %s524_s29 = smov (!%p212_p2), 116   ;;  %s525_s30 = smov (!%p212_p2), 117  }
   0x8   : > { %s526_s7 = smov (!%p212_p2), 108   ;;  %s527_s8 = smov (!%p212_p2), 126  }
   0x9   : > { %s528_s9 = smov (!%p212_p2), 118   ;;  %s529_s10 = smov (!%p212_p2), 127  }
   0xa   : > { %s532_s19 = smov (!%p212_p2), 11  }
   0xb   : > { %s641_s22 = smov (!%p239_p3, %s472_s22), 1  ;;  %v595_v3 = vld [vmem:[%s636_s3] sm:$0xff]  ;;  %vm254_vm0 = vcmask 827392   ;;  %v530_v5 = vmov 1   ;;  %v531_v6 = vmov 0   ;;  %vm250_vm1 = vcmask 830464  }
   0xc   : > { %s477_s23 = sshll.u32 %s641_s22, 2  ;;  %v253_v4 = vld [vmem:[%s637_s4] sm:$0x1]  ;;  %510 = vset.pattern.permute.xlu0 %v530_v5  ;;  %509 = vset.pattern.permute.xlu2 %v531_v6  ;;  %252 = vst.msk [vmem:[#allocation2 + $0x4] sm:$0xf] %vm250_vm1, %v531_v6  ;;  %vm276_vm2 = vcmask 1043456  }
   0xd   : > { %s242_s26 = scalar_lea.vmem %s633_s0, %s477_s23  ;;  %255 = vst.msk [vmem:[#allocation2 + $0x4] sm:$0x1] %vm254_vm0, %v253_v4  ;;  %v293_v20 = vld [vmem:[%s634_s1] sm:$0xf]  ;;  %vm294_vm3 = vcmask 588800   ;;  %vm335_vm4 = vcmask 740440  }
   0xe   : > { %v256_v0 = vld [vmem:[%s242_s26] sm:$0xf]  ;;  %251 = vst.msk [vmem:[#allocation2] sm:$0xf] %vm250_vm1, %v531_v6  ;;  %v533_v36 = vmov 3   ;;  %v534_v37 = vmov 2  }
   0xf   : > { %v258_v1 = vunpack.c.l.b16 %v256_v0  ;;  %v513_v25 = vld [vmem:[%s638_s5] ss:$0 sm:$0xff]  ;;  %vm376_vm5 = vcmask 130048   ;;  %s478_s24 = sshll.u32 %s641_s22, 3  ;;  %vm417_vm6 = vcmask 654336  }
  0x10   : > { %v369_v40 = vld [vmem:[%s635_s2] sm:$0xff] }
  0x11   : > { %v259_v2 = vpack.c.b16 %v258_v1, %v258_v1  ;;  %v372_v42 = vunpack.c.h.b16 %v369_v40  ;;  %v371_v48 = vunpack.c.l.b16 %v369_v40 }
  0x13   : > { %272 = vrot.lane.b32.xlu1 %v259_v2, %s522_s27  ;;  %274 = vrot.lane.b32.xlu0 %v259_v2, %s523_s28  ;;  %v374_v44 = vpack.c.b16 %v372_v42, %v372_v42  ;;  %v373_v49 = vpack.c.b16 %v371_v48, %v371_v48 }
  0x14   : > { %268 = vrot.lane.b32.xlu2 %v259_v2, %s524_s29  ;;  %v487_v32 = vld [vmem:[#allocation2] sm:$0xf0] }
  0x1b   : > { %266 = vrot.lane.b32.xlu1 %v259_v2, %s525_s30  ;;  %270 = vrot.lane.b32.xlu0 %v259_v2, %s526_s7 }
  0x1c   : > { %262 = vrot.lane.b32.xlu2 %v259_v2, %s527_s8 }
  0x23   : > { %264 = vrot.lane.b32.xlu0 %v259_v2, %s528_s9  ;;  %260 = vrot.lane.b32.xlu1 %v259_v2, %s529_s10 }
  0x24   : > { %316 = vperm.xlu2 %509, %v595_v3  }
  0x2b   : > { %321 = vperm.xlu0 %510, %v595_v3  }
  0x2c   : > { %511 = vset.pattern.permute.xlu2 %v534_v37 }
  0x33   : > { %512 = vset.pattern.permute.xlu0 %v533_v36 }
  0x6e   : > { %v269_v10 = vpop.permute.xlu2 %268 }
  0x76   : > { %v263_v15 = vpop.permute.xlu2 %262 }
  0x7e   : > { %v317_v21 = vpop.permute.xlu2 %316 }
  0x85   : > { %v273_v7 = vpop.permute.xlu1 %272  ;;  %v275_v8 = vpop.permute.xlu0 %274 }
  0x86   : > { %v299_v9 = vsel %vm276_vm2, %v275_v8, 0 }
  0x87   : > { %304 = vmatpush.bf16.msra.mxu0 %v299_v9 }
  0x8d   : > { %v267_v11 = vpop.permute.xlu1 %266  ;;  %v271_v12 = vpop.permute.xlu0 %270 }
  0x8e   : > { %v291_v13 = vsel %vm276_vm2, %v271_v12, %v273_v7  ;;  %v287_v14 = vsel %vm276_vm2, %v267_v11, %v269_v10 }
  0x8f   : > { %305 = vmatpush.bf16.msra.mxu0 %v291_v13 }
  0x93   : > { %306 = vmatpush.bf16.msra.mxu0 %v287_v14 }
  0x95   : > { %v265_v16 = vpop.permute.xlu0 %264  ;;  %v261_v17 = vpop.permute.xlu1 %260 }
  0x96   : > { %v283_v18 = vsel %vm276_vm2, %v263_v15, %v265_v16  ;;  %v279_v19 = vsel %vm276_vm2, %v256_v0, %v261_v17 }
  0x97   : > { %307 = vmatpush.bf16.msra.mxu0 %v283_v18 }
  0x9b   : > { %308 = vmatpush.bf16.msra.mxu0 %v279_v19 }
  0x9d   : > { %v322_v23 = vpop.permute.xlu0 %321 }
  0x9e   : > { %479 = vmatmul.msk.bf16.vlgmr.msra.gmra.mxu0 %vm294_vm3, %v293_v20 }
 0x11b   : > { %v310_v22 = vpop.f32.mrf.mxu0 }
 0x11c   : > { %v319_v24 = vmul.f32 %v317_v21, %v310_v22 }
 0x11e   : > { %v324_v26 = vadd.f32 %v322_v23, %v319_v24 }
 0x120   : > { %v325_v27 = vmax.f32 %v324_v26, 0.0 }
 0x122   : > { %v329_v28 = vmul.f32 %v513_v25, %v325_v27 }
 0x123   : > { %v312_v29 = vpop.f32.mrf.mxu0 }
 0x124   : > { %v330_v30 = vpack.c.bf16 %v329_v28, %v329_v28 }
 0x126   : > { %332 = vrot.lane.b32.xlu1 %v330_v30, %s532_s19 }
 0x198   : > { %v333_v31 = vpop.permute.xlu1 %332 }
 0x199   : > { %336 = vst.msk [vmem:[#allocation2] sm:$0xf] %vm335_vm4, %v333_v31 }
 0x1a0   : > { %v482_v33 = vld [vmem:[#allocation2] sm:$0xf] }
 0x1a1   : > { %v483_v34 = vor.u32 %v487_v32, %v482_v33 }
 0x1a3   : > { %354 = vrot.lane.b32.xlu0 %v483_v34, %s525_s30  ;;  %360 = vrot.lane.b32.xlu1 %v483_v34, %s526_s7 }
 0x1a4   : > { %363 = vrot.lane.b32.xlu2 %v483_v34, %s522_s27  ;;  %s246_s27 = scalar_lea.vmem %s639_s6, %s478_s24 }
 0x1ab   : > { %366 = vrot.lane.b32.xlu0 %v483_v34, %s523_s28  ;;  %351 = vrot.lane.b32.xlu1 %v483_v34, %s528_s9 }
 0x1ac   : > { %357 = vrot.lane.b32.xlu2 %v483_v34, %s524_s29 }
 0x1b3   : > { %345 = vrot.lane.b32.xlu1 %v483_v34, %s529_s10  ;;  %412 = vperm.xlu0 %512, %v595_v3  }
 0x1b4   : > { %348 = vrot.lane.b32.xlu2 %v483_v34, %s527_s8 }
 0x1bc   : > { %407 = vperm.xlu2 %511, %v595_v3  }
 0x1fe   : > { %v364_v35 = vpop.permute.xlu2 %363 }
 0x1ff   : > { %380 = vmatpush.bf16.msra.mxu1 %v364_v35 }
 0x206   : > { %v358_v41 = vpop.permute.xlu2 %357 }
 0x20e   : > { %v349_v46 = vpop.permute.xlu2 %348 }
 0x215   : > { %v355_v38 = vpop.permute.xlu0 %354  ;;  %v361_v39 = vpop.permute.xlu1 %360 }
 0x216   : > { %381 = vmatpush.bf16.msra.mxu1 %v361_v39  ;;  %v408_v53 = vpop.permute.xlu2 %407 }
 0x21a   : > { %382 = vmatpush.bf16.msra.mxu1 %v358_v41 }
 0x21d   : > { %v367_v43 = vpop.permute.xlu0 %366  ;;  %v352_v45 = vpop.permute.xlu1 %351 }
 0x21e   : > { %383 = vmatpush.bf16.msra.mxu1 %v355_v38  ;;  %400 = vmatpush.bf16.msra.mxu2 %v367_v43 }
 0x221   : > { %484 = vmatmul.msk.bf16.vlgmr.msra.gmra.mxu2 %vm376_vm5, %v374_v44 }
 0x222   : > { %384 = vmatpush.bf16.msra.mxu1 %v352_v45 }
 0x225   : > { %v346_v47 = vpop.permute.xlu1 %345  ;;  %v413_v55 = vpop.permute.xlu0 %412 }
 0x226   : > { %385 = vmatpush.bf16.msra.mxu1 %v349_v46 }
 0x22a   : > { %386 = vmatpush.bf16.msra.mxu1 %v346_v47 }
 0x22e   : > { %387 = vmatpush.bf16.msra.mxu1 %v483_v34 }
 0x231   : > { %388 = vmatmul.bf16.vlgmr.msra.gmra.mxu1 %v373_v49 }
 0x2a4   : > { %v402_v50 = vpop.f32.mrf.mxu2 }
 0x2ac   : > { %v404_v51 = vpop.f32.mrf.mxu2 }
 0x2ae   : > { %v389_v52 = vpop.f32.mrf.mxu1 }
 0x2af   : > { %v403_v54 = vadd.f32 %v402_v50, %v389_v52 }
 0x2b1   : > { %v410_v56 = vmul.f32 %v408_v53, %v403_v54 }
 0x2b3   : > { %v415_v57 = vadd.f32 %v413_v55, %v410_v56 }
 0x2b5   : > { %v416_v58 = vmax.f32 %v415_v57, 0.0 }
 0x2b6   : > { %v391_v59 = vpop.f32.mrf.mxu1 }
 0x2b7   : > { %418 = vst.msk [vmem:[%s246_s27] sm:$0xff] %vm417_vm6, %v416_v58 }
 0x2b8 PF: > { %s16_s21 = sadd.s32 1, %s520_s21  }
 0x2b9   : > { %p13_p4 = scmp.ge.s32.totalorder %s16_s21, 4  }
 0x2bb   :  { %15 = sbr.rel (!%p13_p4) target bundleno = 1 (0x1), region = 74 }

</bundles_post_ra>
